<compile_context>
chip_gen: v6e
topology: v6e:2x2x1
jax: 0.10.0
libtpu: 0.0.40
codegen_flags: <defaults>
</compile_context>

<pallas_src>
import functools

import jax
import jax.numpy as jnp
from jax.experimental import pallas as pl
from jax.experimental.pallas import tpu as pltpu


def _svq_kernel(x_ref, w_ref, wt_ref, csqr_ref, quant_ref, sse_ref, cnt_ref,
                *, K_pad, n_inner, tile_t, valid_t, mm_dtype):
    i = pl.program_id(2)

    @pl.when(i == 0)
    def _():
        sse_ref[...] = jnp.zeros_like(sse_ref)
        cnt_ref[...] = jnp.zeros_like(cnt_ref)

    x = x_ref[0]                                              # (D, Tt) f32

    # --- distances: single block-diagonal MXU matmul for both sub-codebooks
    dots = jnp.dot(w_ref[...], x.astype(mm_dtype),
                   preferred_element_type=jnp.float32)        # (2K, Tt)
    # ||code||^2 - 2<code, x_half>; ||x||^2 dropped (constant per column),
    # -2 already folded into w_ref by the wrapper.
    dis = csqr_ref[...] + dots

    # --- per-half argmin with first-index tie break (shared iota) ----------
    K2 = 2 * K_pad
    iota2 = jax.lax.broadcasted_iota(jnp.int32, (K2, tile_t), 0)
    iota1 = iota2[:K_pad]                                     # aligned sublane slice
    dis1, dis2 = dis[:K_pad], dis[K_pad:]
    min1 = jnp.min(dis1, axis=0, keepdims=True)
    min2 = jnp.min(dis2, axis=0, keepdims=True)
    idx1 = jnp.min(jnp.where(dis1 <= min1, iota1, K_pad), axis=0, keepdims=True)
    idx2 = jnp.min(jnp.where(dis2 <= min2, iota1, K_pad), axis=0, keepdims=True)
    onehot_b = jnp.logical_or(iota2 == idx1, iota2 == idx2 + K_pad)  # (2K, Tt)

    if valid_t is not None:
        # Mask time-padding columns so counts / SSE / quant stay exact.
        g = pl.program_id(1) * n_inner + i
        lane = jax.lax.broadcasted_iota(jnp.int32, (1, tile_t), 1)
        onehot_b = jnp.logical_and(onehot_b, lane < (valid_t - g * tile_t))

    onehot = onehot_b.astype(jnp.float32)

    # --- lane-dense per-code counts: aligned 128-lane VPU folds -------------
    folded = onehot[:, 0:128]
    for g in range(1, tile_t // 128):
        folded = folded + onehot[:, g * 128:(g + 1) * 128]
    cnt_ref[0] += folded                                      # (2K, 128)

    # --- quantize: single block-diagonal MXU matmul, stored without concat --
    quant = jnp.dot(wt_ref[...], onehot.astype(mm_dtype),
                    preferred_element_type=jnp.float32)       # (D, Tt)
    quant_ref[0] = quant.astype(quant_ref.dtype)

    diff = quant - x                                          # padded cols: 0 - 0
    # lane-parallel SSE partial; scalar reduce happens in the wrapper
    sse_ref[0] += jnp.sum(diff * diff, axis=0, keepdims=True)  # (1, Tt)


def _vmem_capacity_bytes(default=64 << 20):
    try:
        return int(getattr(pltpu.get_tpu_info(), "vmem_capacity_bytes", default))
    except Exception:
        return default


def _choose_time_tiling(T, max_tile):
    """Pad T to a multiple of 128 and pick the largest 128-multiple tile <= max_tile."""
    max_tile = max(128, (max_tile // 128) * 128)
    tile = min(max_tile, ((T + 127) // 128) * 128)
    T_pad = ((T + tile - 1) // tile) * tile
    return T_pad, tile


def sliced_vector_quantize_ema_forward(x, emb1, emb2, beta=0.25,
                                       max_tile_t=None, bf16_dots=False,
                                       quant_dtype=jnp.float32):
    """x: (B, D, T) f32; emb1/emb2: (K, D//2) f32.

    Returns (quant: (B, D, T), vq_loss: scalar, perplexity: scalar), matching
    SlicedVectorQuantizeEMA.forward in eval mode (forward values only).

    bf16_dots=True keeps bf16 codebooks resident (recommended on v5e/v6e where
    f32 MXU matmul is 3-6x slower) but near-tied codes may flip vs. the f32
    reference, so it is off by default.
    """
    B, D, T = x.shape
    K, sub_D = emb1.shape
    assert emb2.shape == (K, sub_D)
    assert D == 2 * sub_D

    x = x.astype(jnp.float32)
    emb1 = emb1.astype(jnp.float32)
    emb2 = emb2.astype(jnp.float32)

    # --- codebook prep (once, in the wrapper; resident constants in VMEM) ---
    K_pad = ((K + 7) // 8) * 8                       # sublane-aligned halves
    if K_pad != K:
        zpad = jnp.zeros((K_pad - K, sub_D), jnp.float32)
        e1 = jnp.concatenate([emb1, zpad], axis=0)
        e2 = jnp.concatenate([emb2, zpad], axis=0)
    else:
        e1, e2 = emb1, emb2
    z = jnp.zeros((K_pad, sub_D), jnp.float32)
    w_block = jnp.concatenate(
        [jnp.concatenate([e1, z], axis=1),
         jnp.concatenate([z, e2], axis=1)], axis=0)           # (2K_pad, D)
    mm_dtype = jnp.bfloat16 if bf16_dots else jnp.float32
    w_neg2 = (-2.0 * w_block).astype(mm_dtype)                # -2 folded in
    w_t = w_block.T.astype(mm_dtype)                          # (D, 2K_pad)
    csqr = jnp.sum(w_block * w_block, axis=1, keepdims=True)  # (2K_pad, 1)
    if K_pad != K:
        # padded (all-zero) codes must never win the argmin
        row = jnp.arange(2 * K_pad)[:, None]
        csqr = jnp.where((row % K_pad) >= K, 1e30, csqr)
    K2 = 2 * K_pad

    # --- time tiling: pad T to a multiple of 128, derive tile from VMEM -----
    vmem_cap = _vmem_capacity_bytes()
    vmem_budget = max(32 << 20, int(0.75 * vmem_cap))         # leave headroom (v7x!)
    if max_tile_t is None:
        per_lane = 4 * (8 * D + 8 * K2)                       # working bytes / lane
        const_b = 4 * (2 * K2 * D + K2 * 130)
        fit = max(128, (vmem_budget // 2 - const_b) // max(per_lane, 1))
        max_tile_t = min(1024, max(128, (fit // 128) * 128))
    T_pad, tile_t = _choose_time_tiling(T, max_tile_t)
    if T_pad != T:
        x = jnp.pad(x, ((0, 0), (0, 0), (0, T_pad - T)))
    n_t = T_pad // tile_t

    # Split T into an outer "parallel" chunk when the batch alone cannot keep
    # both v7x TensorCores busy (no-op on single-TC v5e/v6e).
    n_outer = 2 if (B == 1 and n_t >= 2 and n_t % 2 == 0) else 1
    n_inner = n_t // n_outer
    NP = B * n_outer

    qb = jnp.dtype(quant_dtype).itemsize
    wb = jnp.dtype(mm_dtype).itemsize
    est = (2 * 4 * D * tile_t            # x tiles, double-buffered
           + 2 * qb * D * tile_t         # quant tiles, double-buffered
           + 2 * 2 * wb * K2 * D         # resident codebooks (W, Wt)
           + 2 * 4 * K2                  # csqr
           + 2 * 4 * tile_t              # sse accumulator block
           + 2 * 4 * K2 * 128            # cnt accumulator block
           + 6 * 4 * K2 * tile_t         # dis/onehot/iota live values
           + 4 * 4 * D * tile_t)         # headroom
    vmem_limit = int(min(max(2 * est, 32 << 20), vmem_budget))

    n_cols = B * T_pad
    cost = pl.CostEstimate(
        flops=2 * 2 * K2 * D * n_cols,   # two MXU matmuls per column
        transcendentals=0,
        bytes_accessed=(4 * B * D * T_pad + qb * B * D * T_pad
                        + 2 * wb * K2 * D + 4 * K2
                        + 4 * NP * tile_t + 4 * NP * K2 * 128),
    )

    kernel = functools.partial(
        _svq_kernel, K_pad=K_pad, n_inner=n_inner, tile_t=tile_t,
        valid_t=(T if T_pad != T else None), mm_dtype=mm_dtype)

    quant_pad, sse_part, cnt_part = pl.pallas_call(
        kernel,
        out_shape=(
            jax.ShapeDtypeStruct((B, D, T_pad), quant_dtype),
            jax.ShapeDtypeStruct((NP, 1, tile_t), jnp.float32),
            jax.ShapeDtypeStruct((NP, K2, 128), jnp.float32),
        ),
        grid_spec=pltpu.PrefetchScalarGridSpec(
            num_scalar_prefetch=0,
            grid=(B, n_outer, n_inner),
            in_specs=[
                pl.BlockSpec((1, D, tile_t),
                             lambda b, o, i: (b, 0, o * n_inner + i)),
                pl.BlockSpec((K2, D), lambda b, o, i: (0, 0)),
                pl.BlockSpec((D, K2), lambda b, o, i: (0, 0)),
                pl.BlockSpec((K2, 1), lambda b, o, i: (0, 0)),
            ],
            out_specs=[
                pl.BlockSpec((1, D, tile_t),
                             lambda b, o, i: (b, 0, o * n_inner + i)),
                pl.BlockSpec((1, 1, tile_t),
                             lambda b, o, i: (b * n_outer + o, 0, 0)),
                pl.BlockSpec((1, K2, 128),
                             lambda b, o, i: (b * n_outer + o, 0, 0)),
            ],
        ),
        compiler_params=pltpu.CompilerParams(
            dimension_semantics=("parallel", "parallel", "arbitrary"),
            vmem_limit_bytes=vmem_limit,
        ),
        cost_estimate=cost,
    )(x, w_neg2, w_t, csqr)

    quant = quant_pad[:, :, :T] if T_pad != T else quant_pad
    N = B * T
    sse = jnp.sum(sse_part)
    vq_loss = beta * sse / (N * D)

    cnt = jnp.sum(cnt_part, axis=(0, 2))                      # (2K_pad,)
    avg1 = cnt[:K] / N
    avg2 = cnt[K_pad:K_pad + K] / N
    perp = (jnp.exp(-jnp.sum(avg1 * jnp.log(avg1 + 1e-10)))
            + jnp.exp(-jnp.sum(avg2 * jnp.log(avg2 + 1e-10))))

    # Straight-through estimator: forward value of quant is unchanged.
    # TODO(synk): wrap in jax.custom_vjp to route gradients as x + sg(quant - x).
    return quant, vq_loss, perp


def _reference_forward(x, emb1, emb2, beta=0.25):
    """Plain-JAX reference mirroring the PyTorch forward (eval mode)."""
    B, D, T = x.shape
    K, sub_D = emb1.shape
    xt = jnp.transpose(x, (0, 2, 1))
    flat = xt.reshape(-1, D)
    f1, f2 = flat[:, :sub_D], flat[:, sub_D:]
    hi = jax.lax.Precision.HIGHEST

    def one(f, emb):
        cs = jnp.sum(emb ** 2, axis=1)
        # ||x||^2 (constant per row) omitted: it cannot change the argmin and
        # omitting it keeps the f32 argmin comparison against the kernel
        # tie-free; vq_loss / perplexity below follow the torch code exactly.
        dis = cs - 2.0 * jnp.dot(f, emb.T, precision=hi)
        idx = jnp.argmax(-dis, axis=1)
        enc = jax.nn.one_hot(idx, K, dtype=jnp.float32)
        q = jnp.dot(enc, emb, precision=hi)
        avg = jnp.mean(enc, axis=0)
        perp = jnp.exp(-jnp.sum(avg * jnp.log(avg + 1e-10)))
        return q, perp

    q1, p1 = one(f1, emb1)
    q2, p2 = one(f2, emb2)
    q = jnp.concatenate([q1, q2], axis=1)
    vq_loss = beta * jnp.mean((q - flat) ** 2)
    quant = q.reshape(B, T, D).transpose(0, 2, 1)
    return quant, vq_loss, p1 + p2


if __name__ == "__main__":
    beta = 0.25

    def run_case(key, B, D, T, K, **kw):
        sub_D = D // 2
        k_x, k_e1, k_e2 = jax.random.split(key, 3)
        x = jax.random.normal(k_x, (B, D, T), dtype=jnp.float32)
        # nn.Embedding(K, sub_D).weight.data.uniform_(-1/K, 1/K)
        emb1 = jax.random.uniform(k_e1, (K, sub_D), minval=-1.0 / K,
                                  maxval=1.0 / K, dtype=jnp.float32)
        emb2 = jax.random.uniform(k_e2, (K, sub_D), minval=-1.0 / K,
                                  maxval=1.0 / K, dtype=jnp.float32)
        quant, vq_loss, perp = sliced_vector_quantize_ema_forward(
            x, emb1, emb2, beta=beta, **kw)
        jax.block_until_ready((quant, vq_loss, perp))
        q_ref, l_ref, p_ref = _reference_forward(x, emb1, emb2, beta=beta)
        assert quant.shape == (B, D, T)
        assert jnp.allclose(quant, q_ref, atol=1e-5)
        assert jnp.allclose(vq_loss, l_ref, rtol=1e-4, atol=1e-6)
        assert jnp.allclose(perp, p_ref, rtol=1e-4, atol=1e-4)

    key = jax.random.PRNGKey(0)
    k1, k2, k3 = jax.random.split(key, 3)
    # Small shapes implied by the module: x (B, D, T), two (K, D//2) codebooks.
    run_case(k1, B=2, D=32, T=16, K=64)                    # padded + masked tile
    run_case(k2, B=1, D=32, T=130, K=64, max_tile_t=128)   # outer-parallel split + mask
    run_case(k3, B=2, D=32, T=256, K=60, max_tile_t=128)   # multi-tile accumulation + K padding

    print("KERNEL_OK")
</pallas_src>

<mosaic_0001>
module attributes {stable_mosaic.version = 11 : i64} {
  func.func @_svq_kernel(%arg0: i32, %arg1: i32, %arg2: i32, %arg3: memref<1x32x128xf32, #tpu.memory_space<vmem>>, %arg4: memref<128x32xf32, #tpu.memory_space<vmem>>, %arg5: memref<32x128xf32, #tpu.memory_space<vmem>>, %arg6: memref<128x1xf32, #tpu.memory_space<vmem>>, %arg7: memref<1x32x128xf32, #tpu.memory_space<vmem>>, %arg8: memref<1x1x128xf32, #tpu.memory_space<vmem>>, %arg9: memref<1x128x128xf32, #tpu.memory_space<vmem>>) attributes {dimension_semantics = [#tpu.dimension_semantics<parallel>, #tpu.dimension_semantics<parallel>, #tpu.dimension_semantics<arbitrary>], iteration_bounds = array<i64: 2, 1, 1>, scalar_prefetch = 0 : i64, scratch_operands = 0 : i64, tpu.core_type = #tpu.core_type<tc>, window_params = [{transform_indices = @transform_0, window_bounds = array<i64: 1, 32, 128>}, {pipeline_mode = #tpu.pipeline_mode<synchronous>, transform_indices = @transform_1, window_bounds = array<i64: 128, 32>}, {pipeline_mode = #tpu.pipeline_mode<synchronous>, transform_indices = @transform_2, window_bounds = array<i64: 32, 128>}, {pipeline_mode = #tpu.pipeline_mode<synchronous>, transform_indices = @transform_3, window_bounds = array<i64: 128, 1>}, {transform_indices = @transform_4, window_bounds = array<i64: 1, 32, 128>}, {transform_indices = @transform_5, window_bounds = array<i64: 1, 1, 128>}, {transform_indices = @transform_6, window_bounds = array<i64: 1, 128, 128>}]} {
    %c0_i32 = arith.constant 0 : i32
    %0 = arith.cmpi eq, %arg2, %c0_i32 : i32
    %1 = arith.extui %0 : i1 to i32
    %c0_i32_0 = arith.constant 0 : i32
    %2 = arith.cmpi ne, %1, %c0_i32_0 : i32
    scf.if %2 {
      %cst_32 = arith.constant 0.000000e+00 : f32
      %69 = vector.broadcast %cst_32 : f32 to vector<1x1x128xf32>
      %c0_33 = arith.constant 0 : index
      %c0_34 = arith.constant 0 : index
      %c0_35 = arith.constant 0 : index
      %70 = vector.load %arg8[%c0_33, %c0_34, %c0_35] : memref<1x1x128xf32, #tpu.memory_space<vmem>>, vector<1x1x128xf32>
      tpu.vector_store %arg8[%c0_33, %c0_34, %c0_35], %69 {strides = array<i32>} : memref<1x1x128xf32, #tpu.memory_space<vmem>>, vector<1x1x128xf32>,
      %cst_36 = arith.constant 0.000000e+00 : f32
      %71 = vector.broadcast %cst_36 : f32 to vector<1x128x128xf32>
      %c0_37 = arith.constant 0 : index
      %c0_38 = arith.constant 0 : index
      %c0_39 = arith.constant 0 : index
      %72 = vector.load %arg9[%c0_37, %c0_38, %c0_39] : memref<1x128x128xf32, #tpu.memory_space<vmem>>, vector<1x128x128xf32>
      tpu.vector_store %arg9[%c0_37, %c0_38, %c0_39], %71 {strides = array<i32>} : memref<1x128x128xf32, #tpu.memory_space<vmem>>, vector<1x128x128xf32>,
    } else {
    }
    %c0 = arith.constant 0 : index
    %c0_1 = arith.constant 0 : index
    %c0_2 = arith.constant 0 : index
    %3 = vector.load %arg3[%c0, %c0_1, %c0_2] : memref<1x32x128xf32, #tpu.memory_space<vmem>>, vector<1x32x128xf32>
    %4 = vector.shape_cast %3 : vector<1x32x128xf32> to vector<32x128xf32>
    %c0_3 = arith.constant 0 : index
    %c0_4 = arith.constant 0 : index
    %5 = vector.load %arg4[%c0_3, %c0_4] : memref<128x32xf32, #tpu.memory_space<vmem>>, vector<128x32xf32>
    %cst = arith.constant dense<0.000000e+00> : vector<128x128xf32>
    %6 = tpu.matmul %5, %4, %cst {dimension_numbers = #tpu.dot_dimension_numbers<[1], [0], [0], [1], [0, 0, 1, 1], [], []>} : vector<128x32xf32>, vector<32x128xf32>, vector<128x128xf32> -> vector<128x128xf32>
    %c0_5 = arith.constant 0 : index
    %c0_6 = arith.constant 0 : index
    %7 = vector.load %arg6[%c0_5, %c0_6] : memref<128x1xf32, #tpu.memory_space<vmem>>, vector<128x1xf32>
    %8 = vector.broadcast %7 : vector<128x1xf32> to vector<128x128xf32>
    %9 = arith.addf %8, %6 : vector<128x128xf32>
    %10 = tpu.iota {dimensions = array<i32: 0>} : vector<128x128xi32>
    %11 = vector.extract_strided_slice %10 {offsets = [0, 0], sizes = [64, 128], strides = [1, 1]} : vector<128x128xi32> to vector<64x128xi32>
    %12 = vector.extract_strided_slice %9 {offsets = [0, 0], sizes = [64, 128], strides = [1, 1]} : vector<128x128xf32> to vector<64x128xf32>
    %13 = vector.extract_strided_slice %9 {offsets = [64, 0], sizes = [64, 128], strides = [1, 1]} : vector<128x128xf32> to vector<64x128xf32>
    %cst_7 = arith.constant dense<0x7F800000> : vector<128xf32>
    %14 = vector.multi_reduction <minimumf>, %12, %cst_7 [0] : vector<64x128xf32> to vector<128xf32>
    %15 = vector.shape_cast %14 : vector<128xf32> to vector<1x128xf32>
    %cst_8 = arith.constant dense<0x7F800000> : vector<128xf32>
    %16 = vector.multi_reduction <minimumf>, %13, %cst_8 [0] : vector<64x128xf32> to vector<128xf32>
    %17 = vector.shape_cast %16 : vector<128xf32> to vector<1x128xf32>
    %18 = vector.broadcast %15 : vector<1x128xf32> to vector<64x128xf32>
    %19 = arith.cmpf ole, %12, %18 : vector<64x128xf32>
    %c64_i32 = arith.constant 64 : i32
    %20 = vector.broadcast %c64_i32 : i32 to vector<64x128xi32>
    %21 = arith.select %19, %11, %20 : vector<64x128xi1>, vector<64x128xi32>
    %cst_9 = arith.constant dense<2147483647> : vector<128xi32>
    %22 = vector.multi_reduction <minsi>, %21, %cst_9 [0] : vector<64x128xi32> to vector<128xi32>
    %23 = vector.shape_cast %22 : vector<128xi32> to vector<1x128xi32>
    %24 = vector.broadcast %17 : vector<1x128xf32> to vector<64x128xf32>
    %25 = arith.cmpf ole, %13, %24 : vector<64x128xf32>
    %c64_i32_10 = arith.constant 64 : i32
    %26 = vector.broadcast %c64_i32_10 : i32 to vector<64x128xi32>
    %27 = arith.select %25, %11, %26 : vector<64x128xi1>, vector<64x128xi32>
    %cst_11 = arith.constant dense<2147483647> : vector<128xi32>
    %28 = vector.multi_reduction <minsi>, %27, %cst_11 [0] : vector<64x128xi32> to vector<128xi32>
    %29 = vector.shape_cast %28 : vector<128xi32> to vector<1x128xi32>
    %30 = vector.broadcast %23 : vector<1x128xi32> to vector<128x128xi32>
    %31 = arith.cmpi eq, %10, %30 : vector<128x128xi32>
    %c64_i32_12 = arith.constant 64 : i32
    %32 = vector.broadcast %c64_i32_12 : i32 to vector<1x128xi32>
    %33 = arith.addi %29, %32 : vector<1x128xi32>
    %34 = vector.broadcast %33 : vector<1x128xi32> to vector<128x128xi32>
    %35 = arith.cmpi eq, %10, %34 : vector<128x128xi32>
    %36 = arith.ori %31, %35 : vector<128x128xi1>
    %c1_i32 = arith.constant 1 : i32
    %37 = arith.muli %arg1, %c1_i32 : i32
    %38 = arith.addi %37, %arg2 : i32
    %39 = tpu.iota {dimensions = array<i32: 1>} : vector<1x128xi32>
    %c128_i32 = arith.constant 128 : i32
    %40 = arith.muli %38, %c128_i32 : i32
    %c16_i32 = arith.constant 16 : i32
    %41 = arith.subi %c16_i32, %40 : i32
    %42 = vector.broadcast %41 : i32 to vector<1x128xi32>
    %43 = arith.cmpi slt, %39, %42 : vector<1x128xi32>
    %44 = vector.broadcast %43 : vector<1x128xi1> to vector<128x128xi1>
    %45 = arith.andi %36, %44 : vector<128x128xi1>
    %46 = arith.extui %45 : vector<128x128xi1> to vector<128x128xi32>
    %47 = arith.sitofp %46 : vector<128x128xi32> to vector<128x128xf32>
    %c0_13 = arith.constant 0 : index
    %c0_14 = arith.constant 0 : index
    %c0_15 = arith.constant 0 : index
    %48 = vector.load %arg9[%c0_13, %c0_14, %c0_15] : memref<1x128x128xf32, #tpu.memory_space<vmem>>, vector<1x128x128xf32>
    %49 = vector.shape_cast %48 : vector<1x128x128xf32> to vector<128x128xf32>
    %50 = arith.addf %49, %47 : vector<128x128xf32>
    %c0_16 = arith.constant 0 : index
    %c0_17 = arith.constant 0 : index
    %c0_18 = arith.constant 0 : index
    %51 = vector.load %arg9[%c0_16, %c0_17, %c0_18] : memref<1x128x128xf32, #tpu.memory_space<vmem>>, vector<1x128x128xf32>
    %52 = vector.shape_cast %51 : vector<1x128x128xf32> to vector<128x128xf32>
    %53 = vector.shape_cast %50 : vector<128x128xf32> to vector<1x128x128xf32>
    tpu.vector_store %arg9[%c0_16, %c0_17, %c0_18], %53 {strides = array<i32>} : memref<1x128x128xf32, #tpu.memory_space<vmem>>, vector<1x128x128xf32>,
    %c0_19 = arith.constant 0 : index
    %c0_20 = arith.constant 0 : index
    %54 = vector.load %arg5[%c0_19, %c0_20] : memref<32x128xf32, #tpu.memory_space<vmem>>, vector<32x128xf32>
    %cst_21 = arith.constant dense<0.000000e+00> : vector<32x128xf32>
    %55 = tpu.matmul %54, %47, %cst_21 {dimension_numbers = #tpu.dot_dimension_numbers<[1], [0], [0], [1], [0, 0, 1, 1], [], []>} : vector<32x128xf32>, vector<128x128xf32>, vector<32x128xf32> -> vector<32x128xf32>
    %c0_22 = arith.constant 0 : index
    %c0_23 = arith.constant 0 : index
    %c0_24 = arith.constant 0 : index
    %56 = vector.load %arg7[%c0_22, %c0_23, %c0_24] : memref<1x32x128xf32, #tpu.memory_space<vmem>>, vector<1x32x128xf32>
    %57 = vector.shape_cast %56 : vector<1x32x128xf32> to vector<32x128xf32>
    %58 = vector.shape_cast %55 : vector<32x128xf32> to vector<1x32x128xf32>
    tpu.vector_store %arg7[%c0_22, %c0_23, %c0_24], %58 {strides = array<i32>} : memref<1x32x128xf32, #tpu.memory_space<vmem>>, vector<1x32x128xf32>,
    %59 = arith.subf %55, %4 : vector<32x128xf32>
    %c0_25 = arith.constant 0 : index
    %c0_26 = arith.constant 0 : index
    %c0_27 = arith.constant 0 : index
    %60 = vector.load %arg8[%c0_25, %c0_26, %c0_27] : memref<1x1x128xf32, #tpu.memory_space<vmem>>, vector<1x1x128xf32>
    %61 = vector.shape_cast %60 : vector<1x1x128xf32> to vector<1x128xf32>
    %62 = arith.mulf %59, %59 : vector<32x128xf32>
    %cst_28 = arith.constant dense<0.000000e+00> : vector<128xf32>
    %63 = vector.multi_reduction <add>, %62, %cst_28 [0] : vector<32x128xf32> to vector<128xf32>
    %64 = vector.shape_cast %63 : vector<128xf32> to vector<1x128xf32>
    %65 = arith.addf %61, %64 : vector<1x128xf32>
    %c0_29 = arith.constant 0 : index
    %c0_30 = arith.constant 0 : index
    %c0_31 = arith.constant 0 : index
    %66 = vector.load %arg8[%c0_29, %c0_30, %c0_31] : memref<1x1x128xf32, #tpu.memory_space<vmem>>, vector<1x1x128xf32>
    %67 = vector.shape_cast %66 : vector<1x1x128xf32> to vector<1x128xf32>
    %68 = vector.shape_cast %65 : vector<1x128xf32> to vector<1x1x128xf32>
    tpu.vector_store %arg8[%c0_29, %c0_30, %c0_31], %68 {strides = array<i32>} : memref<1x1x128xf32, #tpu.memory_space<vmem>>, vector<1x1x128xf32>,
    return
  }
  func.func @transform_0(%arg0: i32, %arg1: i32, %arg2: i32) -> (i32, i32, i32) {
    %c1_i32 = arith.constant 1 : i32
    %0 = arith.muli %arg1, %c1_i32 : i32
    %1 = arith.addi %0, %arg2 : i32
    %c0_i32 = arith.constant 0 : i32
    %c0_i32_0 = arith.constant 0 : i32
    return %arg0, %c0_i32, %1 : i32, i32, i32
  }
  func.func @transform_1(%arg0: i32, %arg1: i32, %arg2: i32) -> (i32, i32) {
    %c0_i32 = arith.constant 0 : i32
    %c0_i32_0 = arith.constant 0 : i32
    %c0_i32_1 = arith.constant 0 : i32
    return %c0_i32, %c0_i32_0 : i32, i32
  }
  func.func @transform_2(%arg0: i32, %arg1: i32, %arg2: i32) -> (i32, i32) {
    %c0_i32 = arith.constant 0 : i32
    %c0_i32_0 = arith.constant 0 : i32
    %c0_i32_1 = arith.constant 0 : i32
    return %c0_i32, %c0_i32_0 : i32, i32
  }
  func.func @transform_3(%arg0: i32, %arg1: i32, %arg2: i32) -> (i32, i32) {
    %c0_i32 = arith.constant 0 : i32
    %c0_i32_0 = arith.constant 0 : i32
    %c0_i32_1 = arith.constant 0 : i32
    return %c0_i32, %c0_i32_0 : i32, i32
  }
  func.func @transform_4(%arg0: i32, %arg1: i32, %arg2: i32) -> (i32, i32, i32) {
    %c1_i32 = arith.constant 1 : i32
    %0 = arith.muli %arg1, %c1_i32 : i32
    %1 = arith.addi %0, %arg2 : i32
    %c0_i32 = arith.constant 0 : i32
    %c0_i32_0 = arith.constant 0 : i32
    return %arg0, %c0_i32, %1 : i32, i32, i32
  }
  func.func @transform_5(%arg0: i32, %arg1: i32, %arg2: i32) -> (i32, i32, i32) {
    %c1_i32 = arith.constant 1 : i32
    %0 = arith.muli %arg0, %c1_i32 : i32
    %1 = arith.addi %0, %arg1 : i32
    %c0_i32 = arith.constant 0 : i32
    %c0_i32_0 = arith.constant 0 : i32
    %c0_i32_1 = arith.constant 0 : i32
    return %1, %c0_i32, %c0_i32_0 : i32, i32, i32
  }
  func.func @transform_6(%arg0: i32, %arg1: i32, %arg2: i32) -> (i32, i32, i32) {
    %c1_i32 = arith.constant 1 : i32
    %0 = arith.muli %arg0, %c1_i32 : i32
    %1 = arith.addi %0, %arg1 : i32
    %c0_i32 = arith.constant 0 : i32
    %c0_i32_0 = arith.constant 0 : i32
    %c0_i32_1 = arith.constant 0 : i32
    return %1, %c0_i32, %c0_i32_0 : i32, i32, i32
  }
}

</mosaic_0001>

<bundles_post_ra>
// kernel: tpu_custom_call.1
= control target key start
LH: loop header
LB: loop body
LE: loop exit
PB: predicated region body
PF: predicated region fallthrough
CT: control target
= control target key end

     0   :  { %12 = vsyncpa [#allocation3], 0  ;;  %s2278_s0 = inlined_call_operand.vmem [shape: f32[2,32,128], index: 0, kind: input, shape index: {}]   ;;  %s2279_s1 = inlined_call_operand.vmem [shape: f32[128,32], index: 1, kind: input, shape index: {}]   ;;  %s2280_s2 = inlined_call_operand.vmem [shape: f32[32,128], index: 2, kind: input, shape index: {}]   ;;  %s2281_s3 = inlined_call_operand.vmem [shape: f32[128,1], index: 3, kind: input, shape index: {}]   ;;  %s2282_s4 = inlined_call_operand.hbm [shape: f32[2,32,128], index: 4, kind: output, shape index: {0}]   ;;  %s2283_s5 = inlined_call_operand.hbm [shape: f32[2,1,128], index: 5, kind: output, shape index: {1}]   ;;  %s2284_s6 = inlined_call_operand.hbm [shape: f32[2,128,128], index: 6, kind: output, shape index: {2}]  }
   0x1   :  { %14 = vsyncpa [#allocation3 + $0x1], 0 }
   0x2   :  { %15 = vsyncpa [#allocation5], 0 }
   0x3   :  { %17 = vsyncpa [#allocation5 + $0x1], 0  ;;  %s1675_s21 = smov 0   ;;  %s1677_s22 = smov 0  }
   0x4   :  { %s1679_s23 = smov 0   ;;  %s1681_s24 = smov 0  }
   0x5   :  { %s1683_s25 = smov 0   ;;  %s1685_s26 = smov 0  }
   0x6 LB: > { %s2286_s27 = sadd.s32 4294967295, %s1630_s26   ;;  %s2285_s28 = sadd.s32 4294967294, %s1630_s26   ;;  %s1630_s26 = sphi %s1685_s26, %s23_s26   ;;  %s1626_s25 = sphi %s1683_s25, %s2300_s25   ;;  %s1622_s24 = sphi %s1681_s24, %s2299_s24   ;;  %s1618_s23 = sphi %s1679_s23, %s2298_s23   ;;  %s1614_s22 = sphi %s1677_s22, %s2297_s22   ;;  %s1610_s21 = sphi %s1675_s21, %s2296_s21  }
   0x7   : > { %s42_s29 = sadd.s32 1, %s1626_s25  ;;  %s146_s30 = sadd.s32 1, %s1618_s23 }
   0x8   : > { %p44_p0 = scmp.ge.s32.totalorder %s42_s29, 2  ;;  %p156_p1 = scmp.ne.s32.totalorder %s1618_s23, %s1614_s22 }
   0x9   : > { %p157_p2 = scmp.eq.s32.totalorder %s2286_s27, 1  ;;  %p162_p3 = scmp.ne.s32.totalorder %s1614_s22, %s1610_s21 }
   0xa   : > { %s2302_s29 = smov (%p44_p0, %s42_s29), 0  ;;  %p163_p5 = scmp.eq.s32.totalorder %s2285_s28, 1 }
   0xb   : > { %p1717_p4 = por %p157_p2, %p156_p1  ;;  %s141_s8 = ssub.s32 %s1626_s25, %s2302_s29 }
   0xc   : > { %p1251_p6 = scmp.ge.s32.totalorder %s1630_s26, 1  ;;  %p144_p7 = scmp.eq.s32.totalorder %s141_s8, 0 }
   0xd   : > { %p1726_p8 = por %p163_p5, %p162_p3  ;;  %p259_p9 = scmp.lt.s32.totalorder %s1630_s26, 3 }
   0xe   : > { %s1732_s10 = scalar_select %p144_p7, %s1618_s23, %s146_s30  }
   0xf   : > { %p260_p10 = pnand %p1251_p6, %p259_p9 }
  0x10   : > { %p303_p11 = scmp.lt.s32.totalorder (!%p260_p10), %s1622_s24, 1  ;;  %s1970_s8 = sand.u32 (!%p260_p10), 1, %s1614_s22  }
  0x11   : > { %263 = sbr.rel (%p260_p10) target bundleno = 609 (0x261), region = 36  ;;  %s1253_s11 = sshll.u32 (!%p260_p10), %s1970_s8, 7 }
  0x12   : > { %s1996_s12 = scalar_lea.vmem (!%p260_p10), [#allocation6], %s1253_s11  ;;  %s2139_s20 = scalar_lea.vmem (!%p260_p10), [#allocation4], %s1970_s8 }
  0x16   : > { %v340_v0 = vld [vmem:[%s2279_s1] sm:$0xff]  ;;  %vm356_vm0 = vcmask 261120   ;;  %v1632_v1 = vmov 0   ;;  %s304_s13 = scalar_select %p303_p11, %s1622_s24, 1  ;;  %v560_v2 = vld [vmem:[%s2281_s3 + $0x50] sm:$0xff]  ;;  %v561_v6 = vld [vmem:[%s2281_s3 + $0x58] sm:$0xff] }
  0x17   : > { %1364 = vmatprep.mubr.msk.f32.mxu0 %vm356_vm0, %v340_v0  ;;  %1497 = vset.pattern.permute.xlu1 %v1632_v1  ;;  %v558_v3 = vld [vmem:[%s2281_s3 + $0x40] sm:$0xff]  ;;  %v559_v8 = vld [vmem:[%s2281_s3 + $0x48] sm:$0xff]  ;;  %v342_v13 = vld [vmem:[%s2279_s1 + $0x10] sm:$0xff] }
  0x18   : > { %1496 = vset.pattern.permute.xlu0 %v1632_v1  ;;  %s1313_s14 = sshll.u32 %s304_s13, 5  ;;  %618 = vperm.xlu1 %1497, %v560_v2   ;;  %v563_v10 = vld [vmem:[%s2281_s3 + $0x68] sm:$0xff]  ;;  %v562_v12 = vld [vmem:[%s2281_s3 + $0x60] sm:$0xff]  ;;  %v565_v14 = vld [vmem:[%s2281_s3 + $0x78] sm:$0xff]  ;;  %s1314_s13 = sshll.u32 %s1622_s24, 9 }
  0x19   : > { %s310_s17 = scalar_lea.vmem %s2278_s0, %s1313_s14  ;;  %608 = vperm.xlu0 %1496, %v558_v3   ;;  %v341_v11 = vld [vmem:[%s2279_s1 + $0x8] sm:$0xff]  ;;  %v343_v15 = vld [vmem:[%s2279_s1 + $0x18] sm:$0xff]  ;;  %v564_v16 = vld [vmem:[%s2281_s3 + $0x70] sm:$0xff]  ;;  %s2152_s16 = scalar_lea.hbm %s2282_s4, %s1314_s13 }
  0x1a   : > { %v1749_v4 = vld [vmem:[%s310_s17 + $0x18] sm:$0xff]  ;;  %v1751_v5 = vld [vmem:[%s310_s17 + $0x10] sm:$0xff]  ;;  %v1758_v7 = vld [vmem:[%s310_s17 + $0x8] sm:$0xff] }
  0x1b   : > { %1356 = vmatprep.subr.mxu0 %v1749_v4  ;;  %v1765_v9 = vld [vmem:[%s310_s17] sm:$0xff]  ;;  %v551_v18 = vld [vmem:[%s2281_s3 + $0x8] sm:$0xff]  ;;  %v346_v21 = vld [vmem:[%s2279_s1 + $0x30] sm:$0xff]  ;;  %s1252_s17 = sshll.u32 %s1970_s8, 5 }
  0x1c   : > { %1357 = vmatpush3.msra.mxu0 %v1749_v4  ;;  %623 = vperm.xlu1 %1497, %v561_v6   ;;  %v344_v17 = vld [vmem:[%s2279_s1 + $0x20] sm:$0xff]  ;;  %v345_v19 = vld [vmem:[%s2279_s1 + $0x28] sm:$0xff]  ;;  %v553_v22 = vld [vmem:[%s2281_s3 + $0x18] sm:$0xff]  ;;  %s288_s30 = scalar_lea.vmem [#allocation2], %s1252_s17  ;;  %s1635_s17 = smov [#allocation2]  }
  0x1d   : > { %1358 = vmatprep.subr.mxu0 %v1751_v5  ;;  %613 = vperm.xlu0 %1496, %v559_v8   ;;  %v550_v20 = vld [vmem:[%s2281_s3] sm:$0xff]  ;;  %v347_v23 = vld [vmem:[%s2279_s1 + $0x38] sm:$0xff]  ;;  %v552_v24 = vld [vmem:[%s2281_s3 + $0x10] sm:$0xff]  ;;  %s1075_s11 = sshll.u32 %s288_s30, 4  ;;  %s1502_s14 = sshll.u32 %s1635_s17, 4  ;;  %s2147_s11 = int_to_ptr.vmem [resolvable:$true] %s1075_s11  ;;  %s1503_s14 = int_to_ptr.vmem [resolvable:$false] %s1502_s14 }
  0x1e   : > { %1359 = vmatpush3.msra.mxu0 %v1751_v5  ;;  %v348_v25 = vld [vmem:[%s2279_s1 + $0x40] sm:$0xff]  ;;  %v555_v26 = vld [vmem:[%s2281_s3 + $0x28] sm:$0xff]  ;;  %v350_v29 = vld [vmem:[%s2279_s1 + $0x50] sm:$0xff]  ;;  %s1498_s19 = scalar_lea.vmem %s2147_s11, 512  ;;  %s1504_s13 = scalar_lea.vmem %s1503_s14, 1024 }
  0x1f   : > { %1360 = vmatprep.subr.mxu0 %v1758_v7  ;;  %v349_v27 = vld [vmem:[%s2279_s1 + $0x48] sm:$0xff]  ;;  %v554_v28 = vld [vmem:[%s2281_s3 + $0x20] sm:$0xff]  ;;  %v557_v30 = vld [vmem:[%s2281_s3 + $0x38] sm:$0xff]  ;;  %p1499_p12 = scmp.ne.s32.totalorder %s2147_s11, %s1498_s19  ;;  %p1505_p1 = scmp.lt.s32.totalorder %s2147_s11, %s1503_s14 }
  0x20   : > { %1361 = vmatpush3.msra.mxu0 %v1758_v7  ;;  %633 = vperm.xlu1 %1497, %v563_v10   ;;  %v351_v31 = vld [vmem:[%s2279_s1 + $0x58] sm:$0xff]  ;;  %v556_v32 = vld [vmem:[%s2281_s3 + $0x30] sm:$0xff]  ;;  %v352_v33 = vld [vmem:[%s2279_s1 + $0x60] sm:$0xff]  ;;  %p1506_p2 = scmp.lt.s32.totalorder %s1504_s13, %s1498_s19 }
  0x21   : > { %1362 = vmatprep.subr.mxu0 %v1765_v9  ;;  %628 = vperm.xlu0 %1496, %v562_v12   ;;  %v353_v34 = vld [vmem:[%s2279_s1 + $0x68] sm:$0xff]  ;;  %v354_v35 = vld [vmem:[%s2279_s1 + $0x70] sm:$0xff]  ;;  %v355_v36 = vld [vmem:[%s2279_s1 + $0x78] sm:$0xff]  ;;  %p1500_p13 = pnand %p1499_p12, %p1717_p4 }
  0x22   : > { %1363 = vmatpush3.msra.mxu0 %v1765_v9  ;;  %v937_v44 = vld [vmem:[%s2280_s2] sm:$0xff]  ;;  %p1507_p3 = por %p1506_p2, %p1505_p1 }
  0x23   : > { %1365 = vmatmul.mubr.msk.f32.vlgmr.msra.gmra.mxu0 %vm356_vm0, %v341_v11  ;;  %1420 = vmatprep.mubr.f32.mxu1 %v937_v44  ;;  %p1501_p0 = pneg %p1500_p13 }
  0x24   : > { %1367 = vmatprep.mubr.msk.f32.mxu0 %vm356_vm0, %v342_v13  ;;  %643 = vperm.xlu1 %1497, %v565_v14  }
  0x25   : > { %638 = vperm.xlu0 %1496, %v564_v16   ;;  %p1508_p5 = pnand %p1507_p3, %p1501_p0 }
  0x27   : > { %1368 = vmatmul.mubr.msk.f32.gmra.mxu0 %vm356_vm0, %v343_v15 }
  0x28   : > { %1370 = vmatprep.mubr.msk.f32.mxu0 %vm356_vm0, %v344_v17  ;;  %573 = vperm.xlu1 %1497, %v551_v18  }
  0x29   : > { %568 = vperm.xlu0 %1496, %v550_v20  }
  0x2b   : > { %1371 = vmatmul.mubr.msk.f32.gmra.mxu0 %vm356_vm0, %v345_v19  ;;  %v662_v19 = vlaneseq }
  0x2c   : > { %1373 = vmatprep.mubr.msk.f32.mxu0 %vm356_vm0, %v346_v21  ;;  %583 = vperm.xlu1 %1497, %v553_v22  }
  0x2d   : > { %578 = vperm.xlu0 %1496, %v552_v24   ;;  %v1886_v24 = vshrl.u32 %v662_v19, 7 }
  0x2f   : > { %1374 = vmatmul.mubr.msk.f32.gmra.mxu0 %vm356_vm0, %v347_v23  ;;  %v1904_v44 = vadd.s32 32, %v1886_v24 }
  0x30   : > { %1376 = vmatprep.mubr.msk.f32.mxu0 %vm356_vm0, %v348_v25  ;;  %593 = vperm.xlu1 %1497, %v555_v26  }
  0x31   : > { %588 = vperm.xlu0 %1496, %v554_v28  }
  0x33   : > { %1377 = vmatmul.mubr.msk.f32.gmra.mxu0 %vm356_vm0, %v349_v27 }
  0x34   : > { %1379 = vmatprep.mubr.msk.f32.mxu0 %vm356_vm0, %v350_v29  ;;  %603 = vperm.xlu1 %1497, %v557_v30   ;;  %v1889_v29 = vadd.s32 8, %v1886_v24 }
  0x35   : > { %598 = vperm.xlu0 %1496, %v556_v32  }
  0x37   : > { %1380 = vmatmul.mubr.msk.f32.gmra.mxu0 %vm356_vm0, %v351_v31  ;;  %v1892_v31 = vadd.s32 16, %v1886_v24 }
  0x38   : > { %1382 = vmatprep.mubr.msk.f32.mxu0 %vm356_vm0, %v352_v33 }
  0x3b   : > { %1383 = vmatmul.mubr.msk.f32.gmra.mxu0 %vm356_vm0, %v353_v34 }
  0x3c   : > { %1385 = vmatprep.mubr.msk.f32.mxu0 %vm356_vm0, %v354_v35 }
  0x3f   : > { %1386 = vmatmul.mubr.msk.f32.gmra.mxu0 %vm356_vm0, %v355_v36  ;;  %v1901_v36 = vadd.s32 24, %v1886_v24 }
  0x93   : > { %v1867_v37 = vpop.permute.xlu1 %618 }
  0x94   : > { %v1869_v38 = vpop.permute.xlu0 %608 }
  0x97   : > { %v1871_v39 = vpop.permute.xlu1 %623 }
  0x98   : > { %v614_v40 = vpop.permute.xlu0 %613 }
  0x9b   : > { %v634_v41 = vpop.permute.xlu1 %633 }
  0x9c   : > { %v629_v42 = vpop.permute.xlu0 %628 }
  0x9f   : > { %v644_v43 = vpop.permute.xlu1 %643 }
  0xa0   : > { %v639_v45 = vpop.permute.xlu0 %638 }
  0xa3   : > { %v574_v46 = vpop.permute.xlu1 %573 }
  0xa4   : > { %v569_v47 = vpop.permute.xlu0 %568 }
  0xa7   : > { %v584_v48 = vpop.permute.xlu1 %583 }
  0xa8   : > { %v579_v50 = vpop.permute.xlu0 %578 }
  0xab   : > { %v594_v53 = vpop.permute.xlu1 %593 }
  0xac   : > { %v589_v55 = vpop.permute.xlu0 %588 }
  0xaf   : > { %v604_v59 = vpop.permute.xlu1 %603 }
  0xb0   : > { %v599_v1 = vpop.permute.xlu0 %598 }
  0xe3   : > { %v1366_v49 = vpop.f32.mrf.mxu0 }
  0xe4   : > { %v647_v0 = vadd.f32 %v1366_v49, %v574_v46 }
  0xe5   : > { %v471_v51 = vpop.f32.mrf.mxu0 }
  0xe6   : > { %v646_v61 = vadd.f32 %v569_v47, %v471_v51 }
  0xe7   : > { %v1369_v52 = vpop.f32.mrf.mxu0 }
  0xe8   : > { %v649_v3 = vadd.f32 %v1369_v52, %v584_v48 }
  0xe9   : > { %v481_v54 = vpop.f32.mrf.mxu0 }
  0xea   : > { %v648_v6 = vadd.f32 %v579_v50, %v481_v54  ;;  %v1923_v50 = vadd.s32 48, %v1886_v24 }
  0xeb   : > { %v1372_v56 = vpop.f32.mrf.mxu0 }
  0xec   : > { %v1878_v62 = vadd.f32 %v1372_v56, %v594_v53 }
  0xed   : > { %v491_v57 = vpop.f32.mrf.mxu0 }
  0xee   : > { %v1876_v58 = vadd.f32 %v589_v55, %v491_v57  ;;  %v680_v12 = vmin.f32 %v647_v0, %v1878_v62 }
  0xef   : > { %v1375_v60 = vpop.f32.mrf.mxu0 }
  0xf0   : > { %v1880_v63 = vadd.f32 %v1375_v60, %v604_v59  ;;  %v679_v8 = vmin.f32 %v646_v61, %v1876_v58 }
  0xf1   : > { %v501_v2 = vpop.f32.mrf.mxu0 }
  0xf2   : > { %v652_v10 = vadd.f32 %v599_v1, %v501_v2  ;;  %v682_v13 = vmin.f32 %v649_v3, %v1880_v63  ;;  %v683_v16 = vmin.f32 %v679_v8, %v680_v12 }
  0xf3   : > { %v1378_v11 = vpop.f32.mrf.mxu0 }
  0xf4   : > { %v681_v14 = vmin.f32 %v648_v6, %v652_v10  ;;  %v1908_v48 = vadd.f32 %v1378_v11, %v614_v40 }
  0xf5   : > { %v511_v15 = vpop.f32.mrf.mxu0 }
  0xf6   : > { %v684_v17 = vmin.f32 %v681_v14, %v682_v13  ;;  %v1911_v49 = vadd.f32 %v1869_v38, %v511_v15 }
  0xf7   : > { %v1381_v18 = vpop.f32.mrf.mxu0 }
  0xf8   : > { %v685_v20 = vmin.f32 %v683_v16, %v684_v17 }
  0xf9   : > { %v521_v21 = vpop.f32.mrf.mxu0 }
  0xfa   : > { %v686_v22 = vrot.slane %v685_v20, 4 }
  0xfb   : > { %v1384_v23 = vpop.f32.mrf.mxu0 }
  0xfc   : > { %v687_v25 = vmin.f32 %v685_v20, %v686_v22  ;;  %v1894_v32 = vadd.f32 %v1384_v23, %v634_v41  ;;  %v1914_v41 = vadd.f32 %v1381_v18, %v1871_v39 }
  0xfd   : > { %v531_v26 = vpop.f32.mrf.mxu0 }
  0xfe   : > { %v688_v27 = vrot.slane %v687_v25, 2  ;;  %v1896_v33 = vadd.f32 %v629_v42, %v531_v26  ;;  %v1917_v42 = vadd.f32 %v1867_v37, %v521_v21  ;;  %v693_v38 = vmin.f32 %v1908_v48, %v1894_v32 }
  0xff   : > { %v1387_v28 = vpop.f32.mrf.mxu0 }
 0x100   : > { %v689_v30 = vmin.f32 %v687_v25, %v688_v27  ;;  %v1898_v34 = vadd.f32 %v1387_v28, %v644_v43  ;;  %v1920_v43 = vadd.s32 40, %v1886_v24  ;;  %v692_v39 = vmin.f32 %v1911_v49, %v1896_v33 }
 0x101   : > { %v541_v35 = vpop.f32.mrf.mxu0 }
 0x102   : > { %v690_v46 = vrot.slane %v689_v30, 1  ;;  %v1906_v47 = vadd.f32 %v639_v45, %v541_v35  ;;  %v1926_v45 = vadd.s32 56, %v1886_v24  ;;  %v695_v37 = vmin.f32 %v1914_v41, %v1898_v34 }
 0x104   : > { %v691_v40 = vmin.f32 %v689_v30, %v690_v46  ;;  %v694_v51 = vmin.f32 %v1917_v42, %v1906_v47 }
 0x106   : > { %vm705_vm1 = vcmp.le.f32.partialorder %v646_v61, %v691_v40  ;;  %vm706_vm2 = vcmp.le.f32.partialorder %v647_v0, %v691_v40  ;;  %vm707_vm3 = vcmp.le.f32.partialorder %v648_v6, %v691_v40  ;;  %vm708_vm4 = vcmp.le.f32.partialorder %v649_v3, %v691_v40 }
 0x107   : > { %vm709_vm5 = vcmp.le.f32.partialorder %v1876_v58, %v691_v40  ;;  %vm710_vm6 = vcmp.le.f32.partialorder %v1878_v62, %v691_v40  ;;  %vm711_vm7 = vcmp.le.f32.partialorder %v652_v10, %v691_v40  ;;  %vm712_vm8 = vcmp.le.f32.partialorder %v1880_v63, %v691_v40 }
 0x108   : > { %v713_v52 = vsel %vm705_vm1, %v1886_v24, 64  ;;  %v714_v53 = vsel %vm706_vm2, %v1889_v29, 64  ;;  %v715_v54 = vsel %vm707_vm3, %v1892_v31, 64  ;;  %v716_v55 = vsel %vm708_vm4, %v1901_v36, 64 }
 0x109   : > { %v717_v56 = vsel %vm709_vm5, %v1904_v44, 64  ;;  %v718_v57 = vsel %vm710_vm6, %v1920_v43, 64  ;;  %v719_v59 = vsel %vm711_vm7, %v1923_v50, 64  ;;  %v720_v58 = vsel %vm712_vm8, %v1926_v45, 64 }
 0x10a   : > { %vm721_vm9 = vcmp.lt.s32.totalorder %v713_v52, %v717_v56  ;;  %vm723_vm10 = vcmp.lt.s32.totalorder %v714_v53, %v718_v57  ;;  %vm725_vm11 = vcmp.lt.s32.totalorder %v715_v54, %v719_v59  ;;  %vm727_vm12 = vcmp.lt.s32.totalorder %v716_v55, %v720_v58 }
 0x10b   : > { %v722_v60 = vsel %vm721_vm9, %v713_v52, %v717_v56  ;;  %v724_v61 = vsel %vm723_vm10, %v714_v53, %v718_v57  ;;  %v726_v62 = vsel %vm725_vm11, %v715_v54, %v719_v59  ;;  %v728_v63 = vsel %vm727_vm12, %v716_v55, %v720_v58 }
 0x10c   : > { %vm729_vm13 = vcmp.lt.s32.totalorder %v722_v60, %v724_v61  ;;  %vm731_vm14 = vcmp.lt.s32.totalorder %v726_v62, %v728_v63  ;;  %v696_v0 = vmin.f32 %v692_v39, %v693_v38  ;;  %v697_v1 = vmin.f32 %v694_v51, %v695_v37 }
 0x10d   : > { %v730_v2 = vsel %vm729_vm13, %v722_v60, %v724_v61  ;;  %v732_v3 = vsel %vm731_vm14, %v726_v62, %v728_v63  ;;  %v1964_v37 = vand.u32 127, %v662_v19  ;;  %v678_v51 = vadd.s32 120, %v1886_v24 }
 0x10e   : > { %vm733_vm15 = vcmp.lt.s32.totalorder %v730_v2, %v732_v3  ;;  %v698_v6 = vmin.f32 %v696_v0, %v697_v1  ;;  %v677_v55 = vadd.s32 112, %v1886_v24  ;;  %v676_v56 = vadd.s32 104, %v1886_v24 }
 0x10f   : > { %v734_v8 = vsel %vm733_vm15, %v730_v2, %v732_v3  ;;  %v675_v19 = vadd.s32 96, %v1886_v24  ;;  %v1633_v57 = vmov 0.0   ;;  %v1634_v58 = vmov 1.0  }
 0x110   : > { %v699_v10 = vrot.slane %v698_v6, 4  ;;  %v735_v11 = vrot.slane %v734_v8, 4  ;;  %v674_v60 = vadd.s32 88, %v1886_v24  ;;  %v673_v62 = vadd.s32 80, %v1886_v24  ;;  %319 = vst [vmem:[%s2139_s20] sm:$0x1] %v1633_v57 }
 0x111   : > { %v672_v0 = vadd.s32 72, %v1886_v24  ;;  %v671_v2 = vadd.s32 64, %v1886_v24 }
 0x112   : > { %v700_v12 = vmin.f32 %v698_v6, %v699_v10  ;;  %vm736_vm0 = vcmp.lt.s32.totalorder %v734_v8, %v735_v11 }
 0x113   : > { %v737_v15 = vsel %vm736_vm0, %v734_v8, %v735_v11  ;;  %v938_v11 = vld [vmem:[%s2280_s2 + $0x8] sm:$0xff] }
 0x114   : > { %v701_v13 = vrot.slane %v700_v12, 2  ;;  %v738_v18 = vrot.slane %v737_v15, 2 }
 0x116   : > { %v702_v14 = vmin.f32 %v700_v12, %v701_v13  ;;  %vm739_vm15 = vcmp.lt.s32.totalorder %v737_v15, %v738_v18  ;;  %v940_v13 = vld [vmem:[%s2280_s2 + $0x18] sm:$0xff] }
 0x118   : > { %v703_v16 = vrot.slane %v702_v14, 1 }
 0x11a   : > { %v704_v17 = vmin.f32 %v702_v14, %v703_v16 }
 0x11c   : > { %vm744_vm1 = vcmp.le.f32.partialorder %v1911_v49, %v704_v17  ;;  %vm745_vm2 = vcmp.le.f32.partialorder %v1908_v48, %v704_v17  ;;  %vm746_vm3 = vcmp.le.f32.partialorder %v1917_v42, %v704_v17  ;;  %vm747_vm4 = vcmp.le.f32.partialorder %v1914_v41, %v704_v17 }
 0x11d   : > { %vm748_vm5 = vcmp.le.f32.partialorder %v1896_v33, %v704_v17  ;;  %vm749_vm6 = vcmp.le.f32.partialorder %v1894_v32, %v704_v17  ;;  %vm750_vm7 = vcmp.le.f32.partialorder %v1906_v47, %v704_v17  ;;  %vm751_vm8 = vcmp.le.f32.partialorder %v1898_v34, %v704_v17 }
 0x11e   : > { %v752_v20 = vsel %vm744_vm1, %v1886_v24, 64  ;;  %v753_v21 = vsel %vm745_vm2, %v1889_v29, 64  ;;  %v754_v22 = vsel %vm746_vm3, %v1892_v31, 64  ;;  %v755_v23 = vsel %vm747_vm4, %v1901_v36, 64 }
 0x11f   : > { %v756_v25 = vsel %vm748_vm5, %v1904_v44, 64  ;;  %v757_v26 = vsel %vm749_vm6, %v1920_v43, 64  ;;  %v758_v27 = vsel %vm750_vm7, %v1923_v50, 64  ;;  %v759_v28 = vsel %vm751_vm8, %v1926_v45, 64 }
 0x120   : > { %vm760_vm9 = vcmp.lt.s32.totalorder %v752_v20, %v756_v25  ;;  %vm762_vm10 = vcmp.lt.s32.totalorder %v753_v21, %v757_v26  ;;  %vm764_vm11 = vcmp.lt.s32.totalorder %v754_v22, %v758_v27  ;;  %vm766_vm12 = vcmp.lt.s32.totalorder %v755_v23, %v759_v28 }
 0x121   : > { %v761_v30 = vsel %vm760_vm9, %v752_v20, %v756_v25  ;;  %v763_v32 = vsel %vm762_vm10, %v753_v21, %v757_v26  ;;  %v765_v33 = vsel %vm764_vm11, %v754_v22, %v758_v27  ;;  %v767_v34 = vsel %vm766_vm12, %v755_v23, %v759_v28 }
 0x122   : > { %vm768_vm13 = vcmp.lt.s32.totalorder %v761_v30, %v763_v32  ;;  %vm770_vm14 = vcmp.lt.s32.totalorder %v765_v33, %v767_v34  ;;  %v740_v49 = vsel %vm739_vm15, %v737_v15, %v738_v18  ;;  %vm838_vm5 = vcmp.lt.s32.totalorder %v1964_v37, 16 }
 0x123   : > { %v769_v35 = vsel %vm768_vm13, %v761_v30, %v763_v32  ;;  %v771_v46 = vsel %vm770_vm14, %v765_v33, %v767_v34  ;;  %v741_v42 = vrot.slane %v740_v49, 1 }
 0x124   : > { %vm772_vm0 = vcmp.lt.s32.totalorder %v769_v35, %v771_v46 }
 0x125   : > { %v773_v47 = vsel %vm772_vm0, %v769_v35, %v771_v46  ;;  %vm742_vm3 = vcmp.lt.s32.totalorder %v740_v49, %v741_v42 }
 0x126   : > { %v774_v48 = vrot.slane %v773_v47, 4  ;;  %v1967_v52 = vsel %vm742_vm3, %v740_v49, %v741_v42 }
 0x127   : > { %vm798_vm6 = vcmp.eq.s32.totalorder %v678_v51, %v1967_v52  ;;  %vm797_vm11 = vcmp.eq.s32.totalorder %v677_v55, %v1967_v52  ;;  %vm796_vm15 = vcmp.eq.s32.totalorder %v676_v56, %v1967_v52  ;;  %vm795_vm3 = vcmp.eq.s32.totalorder %v675_v19, %v1967_v52 }
 0x128   : > { %vm775_vm1 = vcmp.lt.s32.totalorder %v773_v47, %v774_v48 }
 0x129   : > { %v776_v41 = vsel %vm775_vm1, %v773_v47, %v774_v48 }
 0x12a   : > { %v777_v40 = vrot.slane %v776_v41, 2 }
 0x12c   : > { %vm778_vm2 = vcmp.lt.s32.totalorder %v776_v41, %v777_v40 }
 0x12d   : > { %v779_v38 = vsel %vm778_vm2, %v776_v41, %v777_v40 }
 0x12e   : > { %v780_v39 = vrot.slane %v779_v38, 1 }
 0x130   : > { %vm781_vm4 = vcmp.lt.s32.totalorder %v779_v38, %v780_v39 }
 0x131   : > { %v782_v53 = vsel %vm781_vm4, %v779_v38, %v780_v39 }
 0x132   : > { %v1972_v54 = vadd.s32 64, %v782_v53 }
 0x134   : > { %vm815_vm7 = vcmp.eq.s32.totalorder %v678_v51, %v1972_v54  ;;  %vm814_vm8 = vcmp.eq.s32.totalorder %v677_v55, %v1972_v54  ;;  %vm813_vm12 = vcmp.eq.s32.totalorder %v676_v56, %v1972_v54  ;;  %vm812_vm0 = vcmp.eq.s32.totalorder %v675_v19, %v1972_v54 }
 0x135   : > { %vm831_vm9 = vmor %vm798_vm6, %vm815_vm7  ;;  %vm811_vm4 = vcmp.eq.s32.totalorder %v674_v60, %v1972_v54 }
 0x136   : > { %vm856_vm10 = vmand %vm831_vm9, %vm838_vm5  ;;  %vm810_vm9 = vcmp.eq.s32.totalorder %v673_v62, %v1972_v54 }
 0x137   : > { %v1287_v59 = vsel %vm856_vm10, 1.0, %v1633_v57  ;;  %1388 = vmatprep.subr.msk.mxu1 %vm856_vm10, %v1634_v58  ;;  %vm830_vm13 = vmor %vm797_vm11, %vm814_vm8  ;;  %vm794_vm8 = vcmp.eq.s32.totalorder %v674_v60, %v1967_v52 }
 0x138   : > { %1389 = vmatpush3.msk.msra.mxu1 %vm856_vm10, %v1634_v58  ;;  %vm855_vm14 = vmand %vm830_vm13, %vm838_vm5  ;;  %936 = vst [vmem:[%s1996_s12 + $0x78] sm:$0xff] %v1287_v59  ;;  %vm809_vm13 = vcmp.eq.s32.totalorder %v672_v0, %v1972_v54 }
 0x139   : > { %v1286_v61 = vsel %vm855_vm14, 1.0, %v1633_v57  ;;  %1390 = vmatprep.subr.msk.mxu1 %vm855_vm14, %v1634_v58  ;;  %vm829_vm1 = vmor %vm796_vm15, %vm813_vm12  ;;  %vm793_vm12 = vcmp.eq.s32.totalorder %v673_v62, %v1967_v52 }
 0x13a   : > { %1391 = vmatpush3.msk.msra.mxu1 %vm855_vm14, %v1634_v58  ;;  %vm854_vm2 = vmand %vm829_vm1, %vm838_vm5  ;;  %935 = vst [vmem:[%s1996_s12 + $0x70] sm:$0xff] %v1286_v61  ;;  %vm808_vm1 = vcmp.eq.s32.totalorder %v671_v2, %v1972_v54 }
 0x13b   : > { %v1285_v63 = vsel %vm854_vm2, 1.0, %v1633_v57  ;;  %1392 = vmatprep.subr.msk.mxu1 %vm854_vm2, %v1634_v58  ;;  %vm828_vm6 = vmor %vm795_vm3, %vm812_vm0  ;;  %vm792_vm0 = vcmp.eq.s32.totalorder %v672_v0, %v1967_v52 }
 0x13c   : > { %1393 = vmatpush3.msk.msra.mxu1 %vm854_vm2, %v1634_v58  ;;  %vm853_vm7 = vmand %vm828_vm6, %vm838_vm5  ;;  %934 = vst [vmem:[%s1996_s12 + $0x68] sm:$0xff] %v1285_v63  ;;  %vm807_vm6 = vcmp.eq.s32.totalorder %v1926_v45, %v1972_v54 }
 0x13d   : > { %v1284_v1 = vsel %vm853_vm7, 1.0, %v1633_v57  ;;  %1394 = vmatprep.subr.msk.mxu1 %vm853_vm7, %v1634_v58  ;;  %vm827_vm10 = vmor %vm794_vm8, %vm811_vm4  ;;  %vm791_vm4 = vcmp.eq.s32.totalorder %v671_v2, %v1967_v52 }
 0x13e   : > { %1395 = vmatpush3.msk.msra.mxu1 %vm853_vm7, %v1634_v58  ;;  %vm852_vm11 = vmand %vm827_vm10, %vm838_vm5  ;;  %933 = vst [vmem:[%s1996_s12 + $0x60] sm:$0xff] %v1284_v1  ;;  %vm806_vm10 = vcmp.eq.s32.totalorder %v1923_v50, %v1972_v54 }
 0x13f   : > { %v1283_v3 = vsel %vm852_vm11, 1.0, %v1633_v57  ;;  %1396 = vmatprep.subr.msk.mxu1 %vm852_vm11, %v1634_v58  ;;  %vm826_vm14 = vmor %vm793_vm12, %vm810_vm9  ;;  %vm790_vm9 = vcmp.eq.s32.totalorder %v1926_v45, %v1967_v52 }
 0x140   : > { %1397 = vmatpush3.msk.msra.mxu1 %vm852_vm11, %v1634_v58  ;;  %vm851_vm15 = vmand %vm826_vm14, %vm838_vm5  ;;  %932 = vst [vmem:[%s1996_s12 + $0x58] sm:$0xff] %v1283_v3  ;;  %vm805_vm14 = vcmp.eq.s32.totalorder %v1920_v43, %v1972_v54 }
 0x141   : > { %v1282_v6 = vsel %vm851_vm15, 1.0, %v1633_v57  ;;  %1398 = vmatprep.subr.msk.mxu1 %vm851_vm15, %v1634_v58  ;;  %vm825_vm2 = vmor %vm792_vm0, %vm809_vm13  ;;  %vm789_vm13 = vcmp.eq.s32.totalorder %v1923_v50, %v1967_v52 }
 0x142   : > { %1399 = vmatpush3.msk.msra.mxu1 %vm851_vm15, %v1634_v58  ;;  %vm850_vm3 = vmand %vm825_vm2, %vm838_vm5  ;;  %931 = vst [vmem:[%s1996_s12 + $0x50] sm:$0xff] %v1282_v6  ;;  %vm804_vm2 = vcmp.eq.s32.totalorder %v1904_v44, %v1972_v54 }
 0x143   : > { %v1281_v8 = vsel %vm850_vm3, 1.0, %v1633_v57  ;;  %1400 = vmatprep.subr.msk.mxu1 %vm850_vm3, %v1634_v58  ;;  %vm824_vm7 = vmor %vm791_vm4, %vm808_vm1  ;;  %vm788_vm1 = vcmp.eq.s32.totalorder %v1920_v43, %v1967_v52 }
 0x144   : > { %1401 = vmatpush3.msk.msra.mxu1 %vm850_vm3, %v1634_v58  ;;  %vm849_vm8 = vmand %vm824_vm7, %vm838_vm5  ;;  %930 = vst [vmem:[%s1996_s12 + $0x48] sm:$0xff] %v1281_v8  ;;  %vm803_vm7 = vcmp.eq.s32.totalorder %v1901_v36, %v1972_v54 }
 0x145   : > { %v1280_v10 = vsel %vm849_vm8, 1.0, %v1633_v57  ;;  %1402 = vmatprep.subr.msk.mxu1 %vm849_vm8, %v1634_v58  ;;  %vm823_vm11 = vmor %vm790_vm9, %vm807_vm6  ;;  %vm787_vm6 = vcmp.eq.s32.totalorder %v1904_v44, %v1967_v52 }
 0x146   : > { %1403 = vmatpush3.msk.msra.mxu1 %vm849_vm8, %v1634_v58  ;;  %vm848_vm12 = vmand %vm823_vm11, %vm838_vm5  ;;  %929 = vst [vmem:[%s1996_s12 + $0x40] sm:$0xff] %v1280_v10  ;;  %vm802_vm11 = vcmp.eq.s32.totalorder %v1892_v31, %v1972_v54 }
 0x147   : > { %v1279_v45 = vsel %vm848_vm12, 1.0, %v1633_v57  ;;  %1404 = vmatprep.subr.msk.mxu1 %vm848_vm12, %v1634_v58  ;;  %vm822_vm15 = vmor %vm789_vm13, %vm806_vm10  ;;  %vm786_vm10 = vcmp.eq.s32.totalorder %v1901_v36, %v1967_v52 }
 0x148   : > { %1405 = vmatpush3.msk.msra.mxu1 %vm848_vm12, %v1634_v58  ;;  %vm847_vm0 = vmand %vm822_vm15, %vm838_vm5  ;;  %928 = vst [vmem:[%s1996_s12 + $0x38] sm:$0xff] %v1279_v45  ;;  %vm801_vm15 = vcmp.eq.s32.totalorder %v1889_v29, %v1972_v54 }
 0x149   : > { %v1278_v50 = vsel %vm847_vm0, 1.0, %v1633_v57  ;;  %1406 = vmatprep.subr.msk.mxu1 %vm847_vm0, %v1634_v58  ;;  %vm821_vm3 = vmor %vm788_vm1, %vm805_vm14  ;;  %vm785_vm14 = vcmp.eq.s32.totalorder %v1892_v31, %v1967_v52 }
 0x14a   : > { %1407 = vmatpush3.msk.msra.mxu1 %vm847_vm0, %v1634_v58  ;;  %vm846_vm4 = vmand %vm821_vm3, %vm838_vm5  ;;  %927 = vst [vmem:[%s1996_s12 + $0x30] sm:$0xff] %v1278_v50  ;;  %vm800_vm3 = vcmp.eq.s32.totalorder %v1886_v24, %v1972_v54 }
 0x14b   : > { %v1277_v43 = vsel %vm846_vm4, 1.0, %v1633_v57  ;;  %1408 = vmatprep.subr.msk.mxu1 %vm846_vm4, %v1634_v58  ;;  %vm820_vm8 = vmor %vm787_vm6, %vm804_vm2  ;;  %vm784_vm2 = vcmp.eq.s32.totalorder %v1889_v29, %v1967_v52 }
 0x14c   : > { %1409 = vmatpush3.msk.msra.mxu1 %vm846_vm4, %v1634_v58  ;;  %vm845_vm9 = vmand %vm820_vm8, %vm838_vm5  ;;  %926 = vst [vmem:[%s1996_s12 + $0x28] sm:$0xff] %v1277_v43 }
 0x14d   : > { %v1276_v44 = vsel %vm845_vm9, 1.0, %v1633_v57  ;;  %1410 = vmatprep.subr.msk.mxu1 %vm845_vm9, %v1634_v58  ;;  %vm819_vm12 = vmor %vm786_vm10, %vm803_vm7  ;;  %vm783_vm7 = vcmp.eq.s32.totalorder %v1886_v24, %v1967_v52  ;;  %v939_v24 = vld [vmem:[%s2280_s2 + $0x10] sm:$0xff] }
 0x14e   : > { %1411 = vmatpush3.msk.msra.mxu1 %vm845_vm9, %v1634_v58  ;;  %vm844_vm13 = vmand %vm819_vm12, %vm838_vm5  ;;  %925 = vst [vmem:[%s1996_s12 + $0x20] sm:$0xff] %v1276_v44 }
 0x14f   : > { %v1275_v36 = vsel %vm844_vm13, 1.0, %v1633_v57  ;;  %1412 = vmatprep.subr.msk.mxu1 %vm844_vm13, %v1634_v58  ;;  %vm818_vm0 = vmor %vm785_vm14, %vm802_vm11 }
 0x150   : > { %1413 = vmatpush3.msk.msra.mxu1 %vm844_vm13, %v1634_v58  ;;  %vm843_vm1 = vmand %vm818_vm0, %vm838_vm5  ;;  %924 = vst [vmem:[%s1996_s12 + $0x18] sm:$0xff] %v1275_v36 }
 0x151   : > { %v1274_v31 = vsel %vm843_vm1, 1.0, %v1633_v57  ;;  %1414 = vmatprep.subr.msk.mxu1 %vm843_vm1, %v1634_v58  ;;  %vm817_vm4 = vmor %vm784_vm2, %vm801_vm15 }
 0x152   : > { %1415 = vmatpush3.msk.msra.mxu1 %vm843_vm1, %v1634_v58  ;;  %vm842_vm6 = vmand %vm817_vm4, %vm838_vm5  ;;  %923 = vst [vmem:[%s1996_s12 + $0x10] sm:$0xff] %v1274_v31 }
 0x153   : > { %v1273_v29 = vsel %vm842_vm6, 1.0, %v1633_v57  ;;  %1416 = vmatprep.subr.msk.mxu1 %vm842_vm6, %v1634_v58  ;;  %vm816_vm8 = vmor %vm783_vm7, %vm800_vm3 }
 0x154   : > { %1417 = vmatpush3.msk.msra.mxu1 %vm842_vm6, %v1634_v58  ;;  %vm841_vm9 = vmand %vm816_vm8, %vm838_vm5  ;;  %922 = vst [vmem:[%s1996_s12 + $0x8] sm:$0xff] %v1273_v29 }
 0x155   : > { %v1272_v12 = vsel %vm841_vm9, 1.0, %v1633_v57  ;;  %1418 = vmatprep.subr.msk.mxu1 %vm841_vm9, %v1634_v58 }
 0x156   : > { %1419 = vmatpush3.msk.msra.mxu1 %vm841_vm9, %v1634_v58  ;;  %921 = vst [vmem:[%s1996_s12] sm:$0xff] %v1272_v12 }
 0x157   : > { %1421 = vmatmul.mubr.f32.vlgmr.msra.gmra.mxu1 %v938_v11 }
 0x158   : > { %1423 = vmatprep.mubr.f32.mxu1 %v939_v24 }
 0x15b   : > { %1424 = vmatmul.mubr.f32.gmra.mxu1 %v940_v13 }
 0x217   : > { %v1422_v14 = vpop.f32.mrf.mxu1 }
 0x218   : > { %1027 = vst [vmem:[%s288_s30 + $0x8] sm:$0xff] %v1422_v14  ;;  %v1031_v16 = vsub.f32 %v1422_v14, %v1758_v7 }
 0x219   : > { %v1007_v15 = vpop.f32.mrf.mxu1 }
 0x21a   : > { %1026 = vst [vmem:[%s288_s30] sm:$0xff] %v1007_v15  ;;  %v1030_v17 = vsub.f32 %v1007_v15, %v1765_v9  ;;  %v1036_v22 = vmul.f32 %v1031_v16, %v1031_v16 }
 0x21b   : > { %v1425_v18 = vpop.f32.mrf.mxu1 }
 0x21c   : > { %v1035_v20 = vmul.f32 %v1030_v17, %v1030_v17  ;;  %1029 = vst [vmem:[%s288_s30 + $0x18] sm:$0xff] %v1425_v18  ;;  %v1033_v7 = vsub.f32 %v1425_v18, %v1749_v4 }
 0x21d   : > { %v1017_v21 = vpop.f32.mrf.mxu1 }
 0x21e   : > { %1028 = vst [vmem:[%s288_s30 + $0x10] sm:$0xff] %v1017_v21  ;;  %v1032_v9 = vsub.f32 %v1017_v21, %v1751_v5 }
 0x21f   : > { %1511 = shalt.err (!%p1508_p5)
}
 0x220   : > { %s1512_s30 = scalar_lea.hbm %s2152_s16, 512  ;;  %s1516_s17 = scalar_lea.hbm %s2282_s4, 1024 }
 0x221   : > { %p1513_p6 = scmp.ne.s32.totalorder %s2152_s16, %s1512_s30  ;;  %p1517_p10 = scmp.lt.s32.totalorder %s2152_s16, %s2282_s4 }
 0x222   : > { %p1518_p11 = scmp.lt.s32.totalorder %s1516_s17, %s1512_s30 }
 0x223   : > { %p1514_p7 = pnand %p1513_p6, %p1717_p4 }
 0x224   : > { %p1519_p12 = por %p1518_p11, %p1517_p10 }
 0x225   : > { %p1515_p9 = pneg %p1514_p7 }
 0x227   : > { %p1520_p13 = pnand %p1519_p12, %p1515_p9 }
 0x229   : > { %1523 = shalt.err (!%p1520_p13)
}
 0x22a   : > { %s2287_s19 = smov 128   ;;  %s2288_s14 = smov 8   ;;  %v1039_v4 = vadd.f32 %v1036_v22, %v1035_v20  ;;  %v1037_v5 = vmul.f32 %v1032_v9, %v1032_v9  ;;  %v1038_v23 = vmul.f32 %v1033_v7, %v1033_v7  ;;  %v1034_v34 = vld [vmem:[%s2139_s20] sm:$0x1] }
 0x22b   : > { %s2291_s27 = scalar_lea.sflag [#allocation3], %s1970_s8  ;;  %s2292_s28 = sadd.s32 4294967295, %s1630_s26  }
 0x22c   : > { %1426 = dma.vmem_to_hbm [thread:$0]  (%p1717_p4), %s2147_s11, 512, %s2152_s16, %s2291_s27, %s2287_s19, %s2287_s19, %s2288_s14   ;;  %v1040_v25 = vadd.f32 %v1039_v4, %v1037_v5 }
 0x22d   : > { %s2184_s18 = sand.u32 1, %s2292_s28   ;;  %s1308_s8 = sshll.u32 %s1622_s24, 4 }
 0x22e   : > { %v1041_v26 = vadd.f32 %v1040_v25, %v1038_v23  ;;  %s1092_s11 = sshll.u32 %s2139_s20, 4  ;;  %s1315_s16 = sshll.u32 %s1622_s24, 11  ;;  %s2196_s11 = int_to_ptr.vmem [resolvable:$true] %s1092_s11 }
 0x22f   : > { %s1106_s13 = sshll.u32 %s1996_s12, 4  ;;  %s2194_s17 = scalar_lea.hbm %s2283_s5, %s1308_s8  ;;  %s2203_s13 = int_to_ptr.vmem [resolvable:$true] %s1106_s13 }
 0x230   : > { %v1042_v27 = vrot.slane %v1041_v26, 4  ;;  %s2201_s28 = scalar_lea.hbm %s2284_s6, %s1315_s16  ;;  %s1056_s24 = scalar_lea.sflag [#allocation5], %s2184_s18 }
 0x231   : > { %s1524_s12 = scalar_lea.vmem %s2196_s11, 16  ;;  %s1638_s8 = smov [#allocation4]  }
 0x232   : > { %v1043_v28 = vadd.f32 %v1042_v27, %v1041_v26  ;;  %p1525_p0 = scmp.ne.s32.totalorder %s2196_s11, %s1524_s12  ;;  %s1528_s30 = sshll.u32 %s1638_s8, 4  ;;  %s1529_s30 = int_to_ptr.vmem [resolvable:$false] %s1528_s30 }
 0x233   : > { %s1530_s15 = scalar_lea.vmem %s1529_s30, 32  ;;  %p1531_p3 = scmp.lt.s32.totalorder %s2196_s11, %s1529_s30 }
 0x234   : > { %v1044_v30 = vrot.slane %v1043_v28, 2  ;;  %p1526_p1 = pnand %p1525_p0, %p1717_p4  ;;  %p1532_p5 = scmp.lt.s32.totalorder %s1530_s15, %s1524_s12 }
 0x236   : > { %v1045_v32 = vadd.f32 %v1044_v30, %v1043_v28  ;;  %p1527_p2 = pneg %p1526_p1  ;;  %p1533_p6 = por %p1532_p5, %p1531_p3 }
 0x238   : > { %v1046_v33 = vrot.slane %v1045_v32, 1  ;;  %p1534_p7 = pnand %p1533_p6, %p1527_p2 }
 0x23a   : > { %v1047_v35 = vadd.f32 %v1046_v33, %v1045_v32 }
 0x23c   : > { %v1048_v46 = vadd.f32 %v1047_v35, %v1034_v34 }
 0x23e   : > { %1049 = vst [vmem:[%s2139_s20] sm:$0x1] %v1048_v46 }
 0x23f   : > { %1537 = shalt.err (!%p1534_p7)
}
 0x240   : > { %s1538_s20 = scalar_lea.hbm %s2194_s17, 16  ;;  %s1542_s27 = scalar_lea.hbm %s2283_s5, 32 }
 0x241   : > { %p1539_p9 = scmp.ne.s32.totalorder %s2194_s17, %s1538_s20  ;;  %p1543_p12 = scmp.lt.s32.totalorder %s2194_s17, %s2283_s5 }
 0x242   : > { %p1544_p13 = scmp.lt.s32.totalorder %s1542_s27, %s1538_s20 }
 0x243   : > { %p1540_p10 = pnand %p1539_p9, %p1717_p4 }
 0x244   : > { %p1545_p0 = por %p1544_p13, %p1543_p12 }
 0x245   : > { %p1541_p11 = pneg %p1540_p10 }
 0x247   : > { %p1546_p1 = pnand %p1545_p0, %p1541_p11 }
 0x249   : > { %1549 = shalt.err (!%p1546_p1)
}
 0x24a   : > { %1427 = dma.vmem_to_hbm [thread:$0]  (%p1717_p4), %s2196_s11, 16, %s2194_s17, %s1056_s24  }
 0x24b   : > { %s1550_s12 = scalar_lea.vmem %s2203_s13, 2048  ;;  %s1639_s14 = smov [#allocation6]  }
 0x24c   : > { %p1551_p2 = scmp.ne.s32.totalorder %s2203_s13, %s1550_s12  ;;  %s1554_s30 = sshll.u32 %s1639_s14, 4  ;;  %s1555_s30 = int_to_ptr.vmem [resolvable:$false] %s1554_s30 }
 0x24d   : > { %s1556_s15 = scalar_lea.vmem %s1555_s30, 4096  ;;  %p1557_p6 = scmp.lt.s32.totalorder %s2203_s13, %s1555_s30 }
 0x24e   : > { %p1552_p3 = pnand %p1551_p2, %p1717_p4  ;;  %p1558_p7 = scmp.lt.s32.totalorder %s1556_s15, %s1550_s12 }
 0x250   : > { %p1553_p5 = pneg %p1552_p3  ;;  %p1559_p9 = por %p1558_p7, %p1557_p6 }
 0x252   : > { %p1560_p10 = pnand %p1559_p9, %p1553_p5 }
 0x254   : > { %1563 = shalt.err (!%p1560_p10)
}
 0x255   : > { %s1564_s20 = scalar_lea.hbm %s2201_s28, 2048  ;;  %s1568_s19 = scalar_lea.hbm %s2284_s6, 4096 }
 0x256   : > { %p1565_p11 = scmp.ne.s32.totalorder %s2201_s28, %s1564_s20  ;;  %p1569_p0 = scmp.lt.s32.totalorder %s2201_s28, %s2284_s6 }
 0x257   : > { %p1570_p1 = scmp.lt.s32.totalorder %s1568_s19, %s1564_s20 }
 0x258   : > { %p1566_p12 = pnand %p1565_p11, %p1717_p4 }
 0x259   : > { %p1571_p2 = por %p1570_p1, %p1569_p0 }
 0x25a   : > { %p1567_p13 = pneg %p1566_p12 }
 0x25c   : > { %p1572_p3 = pnand %p1571_p2, %p1567_p13 }
 0x25e   : > { %1575 = shalt.err (!%p1572_p3)
}
 0x25f   : > { %s2293_s8 = smov 8   ;;  %s2294_s12 = smov 128  }
 0x260   : > { %1428 = dma.vmem_to_hbm [thread:$0]  (%p1717_p4), %s2203_s13, 2048, %s2201_s28, %s1056_s24, %s2294_s12, %s2294_s12, %s2293_s8  }
 0x261 PF: > { %p1442_p5 = scmp.ge.s32.totalorder %s1630_s26, 2  ;;  %s1121_s14 = sand.u32 1, %s1610_s21  }
 0x262   : > { %s1122_s30 = scalar_lea.sflag [#allocation3], %s1121_s14 }
 0x263   : > { %p1433_p6 = pnand %p1442_p5, %p1726_p8 }
 0x265   : > { %p1434_p7 = pneg %p1433_p6 }
 0x267   : > { %1601 = dma.done.wait (%p1434_p7), %s1122_s30, 512  }
 0x268   : > { %1603 = vsyncadd (%p1434_p7), %s1122_s30, 4294966784  ;;  %s2295_s7 = sadd.s32 4294967294, %s1630_s26  }
 0x269   : > { %s1130_s15 = sand.u32 1, %s2295_s7  }
 0x26a   : > { %s1131_s20 = scalar_lea.sflag [#allocation5], %s1130_s15 }
 0x26b   : > { %1605 = dma.done.wait (%p1434_p7), %s1131_s20, 2064  }
 0x26c   : > { %1607 = vsyncadd (%p1434_p7), %s1131_s20, 4294965232  ;;  %s23_s26 = sadd.s32 1, %s1630_s26   ;;  %s2296_s21 = smov %s1614_s22 }
 0x26d   : > { %p20_p4 = scmp.ge.s32.totalorder %s23_s26, 4   ;;  %s2297_s22 = smov %s1618_s23 }
 0x26e   : > { %s2298_s23 = smov %s1732_s10  ;;  %s2299_s24 = smov %s1626_s25 }
 0x26f   : > { %s2300_s25 = smov %s2302_s29  ;;  %22 = sbr.rel (!%p20_p4) target bundleno = 6 (0x6), region = 107 }
 0x274   :  { %1144 = vsyncpa [#allocation3], 1 }
 0x275   :  { %1146 = vsyncpa [#allocation3 + $0x1], 1 }
 0x276   :  { %1147 = vsyncpa [#allocation5], 1 }
 0x277   :  { %1149 = vsyncpa [#allocation5 + $0x1], 1 }

</bundles_post_ra>
